<compile_context>
chip_gen: v6e
topology: v6e:2x2x1
jax: 0.10.0
libtpu: 0.0.40
codegen_flags: <defaults>
</compile_context>

<pallas_src>
import functools

import jax
import jax.numpy as jnp
from jax import lax
from jax.experimental import pallas as pl
from jax.experimental.pallas import tpu as pltpu


_SQRT_2_OVER_PI = 0.7978845608028654
_H_CHUNK = 512


def _gelu_tanh(x):
    # TODO(synk): PyTorch nn.GELU() defaults to the exact erf form; the tanh
    # approximation (max abs err ~1e-3) is used because erf lowering in Mosaic
    # is not guaranteed. The pure-JAX reference below uses the same formula.
    return 0.5 * x * (1.0 + jnp.tanh(_SQRT_2_OVER_PI * (x + 0.044715 * x * x * x)))


# ---------------------------------------------------------------------------
# Kernels
# ---------------------------------------------------------------------------

def _mlp_kernel_simple(x_ref, w1_ref, b1_ref, w2_ref, b2_ref, o_ref):
    """Single-H-chunk path (small hidden dims)."""
    x = x_ref[...]
    h = jnp.dot(x, w1_ref[...], preferred_element_type=jnp.float32)
    h = _gelu_tanh(h + b1_ref[...])                      # biases are already f32
    # TODO(synk): nn.Dropout(p=0.0) / eval mode is the identity; training-mode
    # dropout would use pltpu.prng_seed / prng_random_bits here.
    y = jnp.dot(h.astype(w2_ref.dtype), w2_ref[...],
                preferred_element_type=jnp.float32)
    o_ref[...] = (y + b2_ref[...]).astype(o_ref.dtype)


def _mlp_kernel_chunked(x_ref, w1_ref, b1_ref, w2_ref, b2_ref, o_ref, acc_ref,
                        *, n_chunks, hc):
    """H-chunked path: the live f32 fc1 intermediate is only (TM, hc) and the
    fc2 partial products accumulate into a (TM, D) f32 VMEM scratch."""
    x = x_ref[...]
    acc_ref[...] = jnp.zeros_like(acc_ref)

    def body(j, carry):
        hs = pl.multiple_of(j * hc, hc)          # hc is a multiple of 128 here
        h = jnp.dot(x, w1_ref[:, pl.ds(hs, hc)],
                    preferred_element_type=jnp.float32)
        h = _gelu_tanh(h + b1_ref[:, pl.ds(hs, hc)])
        acc_ref[...] += jnp.dot(h.astype(w2_ref.dtype),
                                w2_ref[pl.ds(hs, hc), :],
                                preferred_element_type=jnp.float32)
        return carry

    lax.fori_loop(0, n_chunks, body, 0, unroll=True)
    o_ref[...] = (acc_ref[...] + b2_ref[...]).astype(o_ref.dtype)


# ---------------------------------------------------------------------------
# Wrapper / tiling heuristics
# ---------------------------------------------------------------------------

def prepare_mlp_params(fc1_w, fc1_b, fc2_w, fc2_b, *, compute_dtype=None):
    """Hoisted out of the per-call path (do this once at parameter-load time):
    weights -> MXU-canonical (in,hidden)/(hidden,out) layout in the compute
    dtype; biases -> f32 rows so the kernel does no per-tile casts."""
    fc1_w = jnp.asarray(fc1_w)
    fc2_w = jnp.asarray(fc2_w)
    if compute_dtype is None:
        compute_dtype = fc1_w.dtype
    w1 = fc1_w.T.astype(compute_dtype)                          # (K, H)
    w2 = fc2_w.T.astype(compute_dtype)                          # (H, D)
    b1 = jnp.asarray(fc1_b).astype(jnp.float32).reshape(1, -1)  # (1, H)
    b2 = jnp.asarray(fc2_b).astype(jnp.float32).reshape(1, -1)  # (1, D)
    return w1, b1, w2, b2


def _vmem_limit_bytes():
    """Generation-aware VMEM ceiling: ~108 MiB on v5e/v6e (128 MiB physical),
    ~54 MiB on v7x (64 MiB per TC), with headroom for compiler scratch."""
    try:
        cap = int(pltpu.get_tpu_info().vmem_capacity_bytes)
    except Exception:                     # defensive: non-TPU / old runtime
        cap = 64 * 1024 * 1024
    return int(min(cap * 0.85, cap - 8 * 1024 * 1024))


def _pick_h_chunk(H):
    """Chunk the hidden dim when it is large and divisible by 512 (128-aligned
    dynamic slices); otherwise fall back to a single chunk."""
    if H <= 2 * _H_CHUNK or H % _H_CHUNK != 0:
        # TODO(synk): ragged H-chunking for H not divisible by 512.
        return H, 1
    return _H_CHUNK, H // _H_CHUNK


def _pick_block_m(M, K, H, D, hc, n_chunks, itemsize, vmem_limit):
    """Pick the token-tile size against the generation's VMEM budget."""
    if M <= 512:
        # One tile equal to the full leading extent (block == full dim
        # exemption); no activation padding / masking needed.
        return M
    resident = (K * H + H * D) * itemsize + 4 * (H + D)   # single-buffered weights + f32 biases
    # Candidates are multiples of 32, keeping bf16 (16,128) / int8 (32,128)
    # sublane packing of the streamed x / out tiles dense (dtype-aware rounding).
    for tm in (512, 256, 128):
        stream = 2 * tm * (K + D) * itemsize              # double-buffered x / out tiles
        scratch = tm * hc * 4 + (tm * D * 4 if n_chunks > 1 else 0)
        if resident + stream + scratch <= 0.8 * vmem_limit:
            return tm
    return 128


def mlp_forward(x, params, *, block_m=None):
    """MLP forward matching the PyTorch module.

    x:      (..., in_features)
    params: output of prepare_mlp_params (w1 (K,H), b1 (1,H) f32, w2 (H,D), b2 (1,D) f32)
    Returns (..., out_features).
    """
    w1, b1, w2, b2 = params
    *lead, K = x.shape
    K_w, H = w1.shape
    H_w, D = w2.shape
    assert K_w == K and H_w == H, "weight shapes inconsistent with input"

    M = 1
    for d in lead:
        M *= d
    x2 = x.reshape(M, K)
    dt = x.dtype
    w_itemsize = jnp.dtype(w1.dtype).itemsize

    vmem_limit = _vmem_limit_bytes()
    hc, n_chunks = _pick_h_chunk(H)
    tm = block_m or _pick_block_m(M, K, H, D, hc, n_chunks, w_itemsize, vmem_limit)
    tm = min(tm, M)
    grid = (pl.cdiv(M, tm),)            # partial tail block is masked by Pallas

    # TODO(synk): large-weight fallback — if (K*H + H*D)*itemsize exceeds ~60%
    # of the VMEM budget, stream the weights over an extra grid axis (D and/or
    # H tiles) with a pl.when-initialized accumulator instead of keeping both
    # weights fully resident.

    def _resident_spec(shape):
        idx = lambda i: (0,) * len(shape)
        try:
            # Constant index_map => fetched once; single-buffer it so the
            # resident weights don't pay the default 2x pipeline buffering.
            return pl.BlockSpec(shape, idx, pipeline_mode=pl.Buffered(1))
        except (AttributeError, TypeError):   # older jax: fall back to default
            return pl.BlockSpec(shape, idx)

    in_specs = [
        pl.BlockSpec((tm, K), lambda i: (i, 0)),   # streamed token tiles
        _resident_spec((K, H)),                    # fc1 weight (resident)
        _resident_spec((1, H)),                    # fc1 bias, f32 (resident)
        _resident_spec((H, D)),                    # fc2 weight (resident)
        _resident_spec((1, D)),                    # fc2 bias, f32 (resident)
    ]
    out_spec = pl.BlockSpec((tm, D), lambda i: (i, 0))

    if n_chunks > 1:
        kernel = functools.partial(_mlp_kernel_chunked, n_chunks=n_chunks, hc=hc)
        scratch_shapes = [pltpu.VMEM((tm, D), jnp.float32)]
    else:
        kernel = _mlp_kernel_simple
        scratch_shapes = []

    cost = pl.CostEstimate(
        flops=2 * M * H * (K + D),
        transcendentals=M * H,
        bytes_accessed=M * (K + D) * jnp.dtype(dt).itemsize
                       + (K * H + H * D) * w_itemsize + 4 * (H + D),
    )

    out = pl.pallas_call(
        kernel,
        out_shape=jax.ShapeDtypeStruct((M, D), dt),
        grid=grid,
        in_specs=in_specs,
        out_specs=out_spec,
        scratch_shapes=scratch_shapes,
        compiler_params=pltpu.CompilerParams(
            dimension_semantics=("parallel",),     # megacore-shardable on v7x
            vmem_limit_bytes=vmem_limit,
        ),
        cost_estimate=cost,
    )(x2, w1, b1, w2, b2)

    return out.reshape(*lead, D)


def _reference(x, fc1_w, fc1_b, fc2_w, fc2_b):
    """Pure-JAX reference (PyTorch nn.Linear layout, same GELU formula)."""
    xf = x.astype(jnp.float32)
    h = xf @ fc1_w.T.astype(jnp.float32) + fc1_b.astype(jnp.float32)
    h = _gelu_tanh(h)
    return h @ fc2_w.T.astype(jnp.float32) + fc2_b.astype(jnp.float32)


if __name__ == "__main__":
    key = jax.random.PRNGKey(0)

    # --- Case 1: small shapes consistent with the module (single-chunk path).
    B, S = 2, 8
    in_features, hidden_features = 32, 64
    out_features = in_features

    kx, kw1, kb1, kw2, kb2, k2 = jax.random.split(key, 6)
    x = jax.random.normal(kx, (B, S, in_features), dtype=jnp.float32)
    fc1_w = 0.05 * jax.random.normal(kw1, (hidden_features, in_features), jnp.float32)
    fc1_b = 0.01 * jax.random.normal(kb1, (hidden_features,), jnp.float32)
    fc2_w = 0.05 * jax.random.normal(kw2, (out_features, hidden_features), jnp.float32)
    fc2_b = 0.01 * jax.random.normal(kb2, (out_features,), jnp.float32)

    params = prepare_mlp_params(fc1_w, fc1_b, fc2_w, fc2_b, compute_dtype=jnp.float32)
    out = jax.block_until_ready(mlp_forward(x, params))
    ref = _reference(x, fc1_w, fc1_b, fc2_w, fc2_b)
    assert out.shape == (B, S, out_features)
    assert jnp.allclose(out, ref, atol=2e-3, rtol=2e-3), "case 1 mismatch vs reference"

    # --- Case 2: exercises the H-chunked loop, the token-tiled grid with a
    # partial (masked) tail block, and single-buffered resident weights.
    B2, S2 = 3, 200                     # M = 600 -> grid of 2, partial tail tile
    K2, H2, D2 = 128, 1536, 128         # H divisible by 512 -> 3 chunks
    kx2, kw3, kb3, kw4, kb4 = jax.random.split(k2, 5)
    x_big = jax.random.normal(kx2, (B2, S2, K2), dtype=jnp.float32)
    w3 = 0.03 * jax.random.normal(kw3, (H2, K2), jnp.float32)
    b3 = 0.01 * jax.random.normal(kb3, (H2,), jnp.float32)
    w4 = 0.03 * jax.random.normal(kw4, (D2, H2), jnp.float32)
    b4 = 0.01 * jax.random.normal(kb4, (D2,), jnp.float32)

    params2 = prepare_mlp_params(w3, b3, w4, b4, compute_dtype=jnp.float32)
    out2 = jax.block_until_ready(mlp_forward(x_big, params2))
    ref2 = _reference(x_big, w3, b3, w4, b4)
    assert out2.shape == (B2, S2, D2)
    assert jnp.allclose(out2, ref2, atol=3e-2, rtol=3e-2), "case 2 mismatch vs reference"

    print("KERNEL_OK")
</pallas_src>

<mosaic_0001>
module attributes {stable_mosaic.version = 11 : i64} {
  func.func @_mlp_kernel_simple(%arg0: i32, %arg1: memref<16x32xf32, #tpu.memory_space<vmem>>, %arg2: memref<32x64xf32, #tpu.memory_space<vmem>>, %arg3: memref<1x64xf32, #tpu.memory_space<vmem>>, %arg4: memref<64x32xf32, #tpu.memory_space<vmem>>, %arg5: memref<1x32xf32, #tpu.memory_space<vmem>>, %arg6: memref<16x32xf32, #tpu.memory_space<vmem>>) attributes {dimension_semantics = [#tpu.dimension_semantics<parallel>], iteration_bounds = array<i64: 1>, scalar_prefetch = 0 : i64, scratch_operands = 0 : i64, tpu.core_type = #tpu.core_type<tc>, window_params = [{transform_indices = @transform_0, window_bounds = array<i64: 16, 32>}, {pipeline_mode = #tpu.pipeline_mode<synchronous>, transform_indices = @transform_1, window_bounds = array<i64: 32, 64>}, {pipeline_mode = #tpu.pipeline_mode<synchronous>, transform_indices = @transform_2, window_bounds = array<i64: 1, 64>}, {pipeline_mode = #tpu.pipeline_mode<synchronous>, transform_indices = @transform_3, window_bounds = array<i64: 64, 32>}, {pipeline_mode = #tpu.pipeline_mode<synchronous>, transform_indices = @transform_4, window_bounds = array<i64: 1, 32>}, {transform_indices = @transform_5, window_bounds = array<i64: 16, 32>}]} {
    %c0 = arith.constant 0 : index
    %c0_0 = arith.constant 0 : index
    %0 = vector.load %arg1[%c0, %c0_0] : memref<16x32xf32, #tpu.memory_space<vmem>>, vector<16x32xf32>
    %c0_1 = arith.constant 0 : index
    %c0_2 = arith.constant 0 : index
    %1 = vector.load %arg2[%c0_1, %c0_2] : memref<32x64xf32, #tpu.memory_space<vmem>>, vector<32x64xf32>
    %cst = arith.constant dense<0.000000e+00> : vector<16x64xf32>
    %2 = tpu.matmul %0, %1, %cst {dimension_numbers = #tpu.dot_dimension_numbers<[1], [0], [0], [1], [0, 0, 1, 1], [], []>} : vector<16x32xf32>, vector<32x64xf32>, vector<16x64xf32> -> vector<16x64xf32>
    %c0_3 = arith.constant 0 : index
    %c0_4 = arith.constant 0 : index
    %3 = vector.load %arg3[%c0_3, %c0_4] : memref<1x64xf32, #tpu.memory_space<vmem>>, vector<1x64xf32>
    %4 = vector.broadcast %3 : vector<1x64xf32> to vector<16x64xf32>
    %5 = arith.addf %2, %4 : vector<16x64xf32>
    %cst_5 = arith.constant 5.000000e-01 : f32
    %6 = vector.broadcast %cst_5 : f32 to vector<16x64xf32>
    %7 = arith.mulf %6, %5 : vector<16x64xf32>
    %cst_6 = arith.constant 4.471500e-02 : f32
    %8 = vector.broadcast %cst_6 : f32 to vector<16x64xf32>
    %9 = arith.mulf %8, %5 : vector<16x64xf32>
    %10 = arith.mulf %9, %5 : vector<16x64xf32>
    %11 = arith.mulf %10, %5 : vector<16x64xf32>
    %12 = arith.addf %5, %11 : vector<16x64xf32>
    %cst_7 = arith.constant 0.797884583 : f32
    %13 = vector.broadcast %cst_7 : f32 to vector<16x64xf32>
    %14 = arith.mulf %13, %12 : vector<16x64xf32>
    %15 = math.tanh %14 : vector<16x64xf32>
    %cst_8 = arith.constant 1.000000e+00 : f32
    %16 = vector.broadcast %cst_8 : f32 to vector<16x64xf32>
    %17 = arith.addf %16, %15 : vector<16x64xf32>
    %18 = arith.mulf %7, %17 : vector<16x64xf32>
    %c0_9 = arith.constant 0 : index
    %c0_10 = arith.constant 0 : index
    %19 = vector.load %arg4[%c0_9, %c0_10] : memref<64x32xf32, #tpu.memory_space<vmem>>, vector<64x32xf32>
    %cst_11 = arith.constant dense<0.000000e+00> : vector<16x32xf32>
    %20 = tpu.matmul %18, %19, %cst_11 {dimension_numbers = #tpu.dot_dimension_numbers<[1], [0], [0], [1], [0, 0, 1, 1], [], []>} : vector<16x64xf32>, vector<64x32xf32>, vector<16x32xf32> -> vector<16x32xf32>
    %c0_12 = arith.constant 0 : index
    %c0_13 = arith.constant 0 : index
    %21 = vector.load %arg5[%c0_12, %c0_13] : memref<1x32xf32, #tpu.memory_space<vmem>>, vector<1x32xf32>
    %22 = vector.broadcast %21 : vector<1x32xf32> to vector<16x32xf32>
    %23 = arith.addf %20, %22 : vector<16x32xf32>
    %c0_14 = arith.constant 0 : index
    %c0_15 = arith.constant 0 : index
    %24 = vector.load %arg6[%c0_14, %c0_15] : memref<16x32xf32, #tpu.memory_space<vmem>>, vector<16x32xf32>
    tpu.vector_store %arg6[%c0_14, %c0_15], %23 {strides = array<i32>} : memref<16x32xf32, #tpu.memory_space<vmem>>, vector<16x32xf32>,
    return
  }
  func.func @transform_0(%arg0: i32) -> (i32, i32) {
    %c0_i32 = arith.constant 0 : i32
    %c0_i32_0 = arith.constant 0 : i32
    return %arg0, %c0_i32 : i32, i32
  }
  func.func @transform_1(%arg0: i32) -> (i32, i32) {
    %c0_i32 = arith.constant 0 : i32
    %c0_i32_0 = arith.constant 0 : i32
    %c0_i32_1 = arith.constant 0 : i32
    return %c0_i32, %c0_i32_0 : i32, i32
  }
  func.func @transform_2(%arg0: i32) -> (i32, i32) {
    %c0_i32 = arith.constant 0 : i32
    %c0_i32_0 = arith.constant 0 : i32
    %c0_i32_1 = arith.constant 0 : i32
    return %c0_i32, %c0_i32_0 : i32, i32
  }
  func.func @transform_3(%arg0: i32) -> (i32, i32) {
    %c0_i32 = arith.constant 0 : i32
    %c0_i32_0 = arith.constant 0 : i32
    %c0_i32_1 = arith.constant 0 : i32
    return %c0_i32, %c0_i32_0 : i32, i32
  }
  func.func @transform_4(%arg0: i32) -> (i32, i32) {
    %c0_i32 = arith.constant 0 : i32
    %c0_i32_0 = arith.constant 0 : i32
    %c0_i32_1 = arith.constant 0 : i32
    return %c0_i32, %c0_i32_0 : i32, i32
  }
  func.func @transform_5(%arg0: i32) -> (i32, i32) {
    %c0_i32 = arith.constant 0 : i32
    %c0_i32_0 = arith.constant 0 : i32
    return %arg0, %c0_i32 : i32, i32
  }
}

</mosaic_0001>

<bundles_post_ra>
// kernel: tpu_custom_call.1
= control target key start
LH: loop header
LB: loop body
LE: loop exit
PB: predicated region body
PF: predicated region fallthrough
CT: control target
= control target key end

     0   :  { %vm34_vm0 = vcmask 261120   ;;  %s418_s0 = inlined_call_operand.vmem [shape: f32[16,32], index: 0, kind: input, shape index: {}]   ;;  %s419_s1 = inlined_call_operand.vmem [shape: f32[32,64], index: 1, kind: input, shape index: {}]   ;;  %s420_s2 = inlined_call_operand.vmem [shape: f32[1,64], index: 2, kind: input, shape index: {}]   ;;  %s421_s3 = inlined_call_operand.vmem [shape: f32[64,32], index: 3, kind: input, shape index: {}]   ;;  %s422_s4 = inlined_call_operand.vmem [shape: f32[1,32], index: 4, kind: input, shape index: {}]   ;;  %s423_s5 = inlined_call_operand.hbm [shape: f32[16,32], index: 5, kind: output, shape index: {}]  }
   0x1   :  { %v26_v0 = vld [vmem:[%s419_s1 + $0x18] sm:$0xff]  ;;  %v25_v1 = vld [vmem:[%s419_s1 + $0x10] sm:$0xff]  ;;  %v21_v2 = vld [vmem:[%s418_s0] sm:$0xff] }
   0x2   :  { %271 = vmatprep.subr.mxu0 %v26_v0  ;;  %v24_v3 = vld [vmem:[%s419_s1 + $0x8] sm:$0xff]  ;;  %279 = vmatprep.mubr.msk.f32.mxu0 %vm34_vm0, %v21_v2 }
   0x3   :  { %272 = vmatpush3.msra.mxu0 %v26_v0 }
   0x4   :  { %10 = vsyncpa [#allocation3], 0  ;;  %273 = vmatprep.subr.mxu0 %v25_v1  ;;  %v23_v4 = vld [vmem:[%s419_s1] sm:$0xff]  ;;  %v22_v5 = vld [vmem:[%s418_s0 + $0x8] sm:$0xff]  ;;  %vm149_vm1 = vcmask 523264   ;;  %s330_s21 = smov [#allocation2]  }
   0x5   :  { %274 = vmatpush3.msra.mxu0 %v25_v1  ;;  %v141_v6 = vld [vmem:[%s421_s3 + $0x38] sm:$0xff]  ;;  %v140_v7 = vld [vmem:[%s421_s3 + $0x30] sm:$0xff]  ;;  %v139_v8 = vld [vmem:[%s421_s3 + $0x28] sm:$0xff]  ;;  %s238_s22 = sshll.u32 %s330_s21, 4  ;;  %s239_s22 = int_to_ptr.vmem [resolvable:$true] %s238_s22 }
   0x6   :  { %275 = vmatprep.subr.mxu0 %v24_v3  ;;  %282 = vmatprep.subr.mxu1 %v141_v6  ;;  %v138_v9 = vld [vmem:[%s421_s3 + $0x20] sm:$0xff]  ;;  %v137_v10 = vld [vmem:[%s421_s3 + $0x18] sm:$0xff]  ;;  %v136_v11 = vld [vmem:[%s421_s3 + $0x10] sm:$0xff]  ;;  %s308_s23 = scalar_lea.vmem %s239_s22, 256  ;;  %p313_p1 = scmp.lt.s32.totalorder %s239_s22, %s239_s22 }
   0x7   :  { %276 = vmatpush3.msra.mxu0 %v24_v3  ;;  %283 = vmatpush3.msra.mxu1 %v141_v6  ;;  %v135_v12 = vld [vmem:[%s421_s3 + $0x8] sm:$0xff]  ;;  %v134_v13 = vld [vmem:[%s421_s3] sm:$0xff]  ;;  %p309_p0 = scmp.ne.s32.totalorder %s239_s22, %s308_s23  ;;  %p314_p2 = scmp.lt.s32.totalorder %s308_s23, %s308_s23 }
   0x8   :  { %277 = vmatprep.subr.mxu0 %v23_v4  ;;  %284 = vmatprep.subr.mxu1 %v140_v7  ;;  %v249_v14 = vld [vmem:[%s420_s2] ss:$0 sm:$0xff] }
   0x9   :  { %278 = vmatpush3.msra.mxu0 %v23_v4  ;;  %285 = vmatpush3.msra.mxu1 %v140_v7  ;;  %v252_v37 = vld [vmem:[%s422_s4] ss:$0 sm:$0xff]  ;;  %p315_p3 = por %p314_p2, %p313_p1 }
   0xa   :  { %280 = vmatmul.mubr.msk.f32.vlgmr.msra.gmra.mxu0 %vm34_vm0, %v22_v5  ;;  %286 = vmatprep.subr.mxu1 %v139_v8 }
   0xb   :  { %287 = vmatpush3.msra.mxu1 %v139_v8  ;;  %p316_p4 = pnand %p315_p3, %p309_p0 }
   0xc   :  { %288 = vmatprep.subr.mxu1 %v138_v9 }
   0xd   :  { %289 = vmatpush3.msra.mxu1 %v138_v9 }
   0xe   :  { %290 = vmatprep.subr.mxu1 %v137_v10 }
   0xf   :  { %291 = vmatpush3.msra.mxu1 %v137_v10 }
  0x10   :  { %292 = vmatprep.subr.mxu1 %v136_v11 }
  0x11   :  { %293 = vmatpush3.msra.mxu1 %v136_v11 }
  0x12   :  { %294 = vmatprep.subr.mxu1 %v135_v12 }
  0x13   :  { %295 = vmatpush3.msra.mxu1 %v135_v12 }
  0x14   :  { %296 = vmatprep.subr.mxu1 %v134_v13 }
  0x15   :  { %297 = vmatpush3.msra.mxu1 %v134_v13 }
  0xca   :  { %v281_v15 = vpop.f32.mrf.mxu0 }
  0xcb   :  { %v113_v16 = vadd.f32 %v281_v15, %v249_v14 }
  0xcc   :  { %v107_v17 = vpop.f32.mrf.mxu0 }
  0xcd   :  { %v119_v18 = vmul.f32 0.044715, %v113_v16  ;;  %v108_v19 = vadd.f32 %v249_v14, %v107_v17  ;;  %v117_v34 = vmul.f32 0.5, %v113_v16 }
  0xcf   :  { %v121_v20 = vmul.f32 %v119_v18, %v113_v16  ;;  %v118_v21 = vmul.f32 0.044715, %v108_v19  ;;  %v116_v32 = vmul.f32 0.5, %v108_v19 }
  0xd1   :  { %v123_v22 = vmul.f32 %v121_v20, %v113_v16  ;;  %v120_v23 = vmul.f32 %v118_v21, %v108_v19 }
  0xd3   :  { %v125_v24 = vadd.f32 %v123_v22, %v113_v16  ;;  %v122_v25 = vmul.f32 %v120_v23, %v108_v19 }
  0xd5   :  { %v124_v26 = vadd.f32 %v122_v25, %v108_v19  ;;  %v127_v27 = vmul.f32 0.7978846, %v125_v24 }
  0xd7   :  { %v126_v28 = vmul.f32 0.7978846, %v124_v26  ;;  %304 = vtanh.f32 %v127_v27 }
  0xd9   :  { %306 = vtanh.f32 %v126_v28 }
  0xe4   :  { %v305_v29 = vpop.eup %304 }
  0xe5   :  { %v131_v31 = vadd.f32 1.0, %v305_v29 }
  0xe6   :  { %v307_v30 = vpop.eup %306 }
  0xe7   :  { %v130_v33 = vadd.f32 1.0, %v307_v30  ;;  %v133_v36 = vmul.f32 %v131_v31, %v117_v34 }
  0xe9   :  { %v132_v35 = vmul.f32 %v130_v33, %v116_v32 }
  0xeb   :  { %298 = vmatprep.mubr.msk.f32.mxu1 %vm149_vm1, %v132_v35 }
  0xec   :  { %299 = vmatmul.mubr.msk.f32.vlgmr.msra.gmra.mxu1 %vm149_vm1, %v133_v36 }
 0x1ac   :  { %v300_v38 = vpop.f32.mrf.mxu1 }
 0x1ad   :  { %v228_v39 = vadd.f32 %v300_v38, %v252_v37 }
 0x1ae   :  { %v222_v40 = vpop.f32.mrf.mxu1 }
 0x1af   :  { %232 = vst.msk [vmem:[#allocation2 + $0x8] sm:$0xff] %vm34_vm0, %v228_v39  ;;  %v223_v41 = vadd.f32 %v252_v37, %v222_v40 }
 0x1b1   :  { %231 = vst.msk [vmem:[#allocation2] sm:$0xff] %vm34_vm0, %v223_v41 }
 0x1b2   :  { %319 = shalt.err (!%p316_p4)
}
 0x1b3   :  { %s331_s24 = smov 128   ;;  %s332_s4 = smov 8  }
 0x1b4   :  { %244 = dma.vmem_to_hbm [thread:$0]  %s239_s22, 256, %s423_s5, [#allocation3], %s331_s24, %s331_s24, %s332_s4  }
 0x1b5   :  { %328 = dma.done.wait [#allocation3], 256  }
 0x1b6   :  { %329 = vsyncadd [#allocation3], 4294967040 }
 0x1b7   :  { %248 = vsyncpa [#allocation3], 1 }

</bundles_post_ra>
